<compile_context>
chip_gen: v5e
topology: v5e:2x2
jax: 0.10.0
libtpu: 0.0.40
codegen_flags: <defaults>
</compile_context>

<pallas_src>
import functools

import jax
import jax.numpy as jnp
from jax.experimental import pallas as pl
from jax.experimental.pallas import tpu as pltpu


def _ls_ce_kernel(logits_ref, targets_ref, loss_ref, count_ref, *,
                  epsilon, ignore_index, num_classes):
    logits = logits_ref[...].astype(jnp.float32)          # (tile_n, C)
    tgt = targets_ref[...]                                 # (tile_n, 1) int32

    # Stable per-row log-sum-exp.
    row_max = jnp.max(logits, axis=-1, keepdims=True)      # (tile_n, 1)
    lse = row_max + jnp.log(
        jnp.sum(jnp.exp(logits - row_max), axis=-1, keepdims=True))

    # Fused smoothed-label weighted sum:
    #   (1-eps)*x[t] + (eps/C)*sum(x) == sum_c w_c * x_c
    on_w = jnp.float32((1.0 - epsilon) + epsilon / num_classes)
    off_w = jnp.float32(epsilon / num_classes)
    cls_ids = jax.lax.broadcasted_iota(jnp.int32, logits.shape, 1)
    weights = jnp.where(cls_ids == tgt, on_w, off_w)       # (tile_n, C)
    weighted = jnp.sum(weights * logits, axis=-1, keepdims=True)

    loss = lse - weighted                                   # (tile_n, 1)

    # Rows whose target is ignore_index (including the ignore_index-padded
    # tail of the last block, whose logits may be garbage) contribute 0.
    # This is a select, not a multiply, so Inf/NaN garbage cannot leak through.
    valid = tgt != ignore_index
    loss = jnp.where(valid, loss, 0.0)

    # Per-tile partial sums; final reduce happens outside the kernel so the
    # grid has no cross-iteration dependency and can run fully parallel.
    loss_ref[0, 0] = jnp.sum(loss)
    count_ref[0, 0] = jnp.sum(valid.astype(jnp.float32))


def _pick_tile_n(n_rows, num_classes, vmem_budget_bytes=10 << 20):
    """Pick a row-tile size: big blocks for HBM roofline, bounded VMEM."""
    # Double-buffered VMEM per row: up to 4*C bytes of logits plus 512 bytes
    # for the lane-padded (tile_n, 1) int32 targets block.
    per_row = 2 * (4 * num_classes + 512)
    t = vmem_budget_bytes // per_row
    t = max(8, min(8192, (t // 8) * 8))
    n_rounded = ((n_rows + 7) // 8) * 8
    return max(8, min(t, n_rounded))


def label_smoothing_cross_entropy(logits, targets, *, num_classes,
                                  epsilon=0.1, ignore_index=-100,
                                  reduction='mean', tile_n=None):
    """Pallas-backed LabelSmoothingCrossEntropy.forward."""
    if logits.ndim == 3:
        logits = logits.reshape(-1, num_classes)
        targets = targets.reshape(-1)
    N, C = logits.shape
    assert C == num_classes
    # TODO(synk): for vocab-scale num_classes, add a C-tiling grid axis with an
    # online (flash-style) logsumexp instead of loading whole rows.

    if tile_n is None:
        tile_n = _pick_tile_n(N, C)
    assert tile_n % 8 == 0, "tile_n must be a multiple of 8"

    num_tiles = int(pl.cdiv(N, tile_n))

    # Only the tiny int32 target vector is padded (to a whole number of tiles)
    # with ignore_index; logits are never copied or padded.
    pad = num_tiles * tile_n - N
    if pad:
        targets = jnp.pad(targets, (0, pad), constant_values=ignore_index)
    targets2d = targets.reshape(-1, 1).astype(jnp.int32)

    kernel = functools.partial(_ls_ce_kernel, epsilon=float(epsilon),
                               ignore_index=int(ignore_index),
                               num_classes=int(num_classes))

    loss_parts, count_parts = pl.pallas_call(
        kernel,
        out_shape=(jax.ShapeDtypeStruct((num_tiles, 1), jnp.float32),
                   jax.ShapeDtypeStruct((num_tiles, 1), jnp.float32)),
        grid_spec=pltpu.PrefetchScalarGridSpec(
            num_scalar_prefetch=0,
            grid=(num_tiles,),
            in_specs=[
                pl.BlockSpec((tile_n, C), lambda i: (i, 0)),
                pl.BlockSpec((tile_n, 1), lambda i: (i, 0)),
            ],
            out_specs=(
                pl.BlockSpec((1, 1), lambda i: (i, 0),
                             memory_space=pltpu.SMEM),
                pl.BlockSpec((1, 1), lambda i: (i, 0),
                             memory_space=pltpu.SMEM),
            ),
        ),
        compiler_params=pltpu.CompilerParams(
            dimension_semantics=("parallel",)),
    )(logits, targets2d)

    loss_sum = jnp.sum(loss_parts)
    count = jnp.sum(count_parts)

    if reduction == 'mean':
        # PyTorch returns 0.0 when there are no valid targets.
        return jnp.where(count > 0.0, loss_sum / jnp.maximum(count, 1.0), 0.0)
    elif reduction == 'sum':
        return loss_sum
    else:
        # TODO(synk): 'none' reduction returns a dynamically-sized per-valid-token
        # vector in PyTorch; not expressible with static shapes here.
        raise NotImplementedError("reduction='none' not supported in this kernel")


def _reference(logits, targets, *, num_classes, epsilon, ignore_index,
               reduction='mean'):
    logits = logits.reshape(-1, num_classes).astype(jnp.float32)
    targets = targets.reshape(-1)
    valid = targets != ignore_index
    log_probs = jax.nn.log_softmax(logits, axis=-1)
    one_hot = jax.nn.one_hot(jnp.where(valid, targets, 0), num_classes)
    smoothed = one_hot * (1.0 - epsilon) + epsilon / num_classes
    per_row = -jnp.sum(log_probs * smoothed, axis=-1)
    per_row = jnp.where(valid, per_row, 0.0)
    if reduction == 'sum':
        return jnp.sum(per_row)
    cnt = jnp.sum(valid)
    return jnp.where(cnt > 0, jnp.sum(per_row) / jnp.maximum(cnt, 1), 0.0)


if __name__ == "__main__":
    key = jax.random.PRNGKey(0)
    k1, k2, k3, k4 = jax.random.split(key, 4)

    # Case 1: NER-like shapes, f32, 'mean' reduction, auto tile_n.
    batch, seq_len, num_classes = 2, 8, 13
    epsilon, ignore_index = 0.1, -100

    logits = jax.random.normal(k1, (batch, seq_len, num_classes), dtype=jnp.float32)
    targets = jax.random.randint(k2, (batch, seq_len), 0, num_classes, dtype=jnp.int32)
    # Mark a few positions as padding (ignored).
    targets = targets.at[0, 0].set(ignore_index)
    targets = targets.at[1, 7].set(ignore_index)

    loss = label_smoothing_cross_entropy(
        logits, targets, num_classes=num_classes,
        epsilon=epsilon, ignore_index=ignore_index, reduction='mean')
    loss = jax.block_until_ready(loss)
    ref = _reference(logits, targets, num_classes=num_classes,
                     epsilon=epsilon, ignore_index=ignore_index)
    assert jnp.allclose(loss, ref, rtol=1e-4, atol=1e-5), (loss, ref)

    # Case 2: N (=21) not a multiple of tile_n (=8) -> exercises the unpadded
    # logits tail masking and multiple parallel grid tiles, with bf16 inputs.
    batch2, seq2 = 3, 7
    logits2 = jax.random.normal(k3, (batch2, seq2, num_classes), dtype=jnp.bfloat16)
    targets2 = jax.random.randint(k4, (batch2, seq2), 0, num_classes, dtype=jnp.int32)
    targets2 = targets2.at[2, 6].set(ignore_index)

    for red in ('mean', 'sum'):
        got = label_smoothing_cross_entropy(
            logits2, targets2, num_classes=num_classes,
            epsilon=epsilon, ignore_index=ignore_index,
            reduction=red, tile_n=8)
        got = jax.block_until_ready(got)
        want = _reference(logits2, targets2, num_classes=num_classes,
                          epsilon=epsilon, ignore_index=ignore_index,
                          reduction=red)
        assert jnp.allclose(got, want, rtol=1e-3, atol=1e-4), (red, got, want)

    print("KERNEL_OK")
</pallas_src>

<mosaic_0001>
module attributes {stable_mosaic.version = 11 : i64} {
  func.func @_ls_ce_kernel(%arg0: i32, %arg1: memref<16x13xf32, #tpu.memory_space<vmem>>, %arg2: memref<16x1xi32, #tpu.memory_space<vmem>>, %arg3: memref<1x1xf32, #tpu.memory_space<smem>>, %arg4: memref<1x1xf32, #tpu.memory_space<smem>>) attributes {dimension_semantics = [#tpu.dimension_semantics<parallel>], iteration_bounds = array<i64: 1>, scalar_prefetch = 0 : i64, scratch_operands = 0 : i64, tpu.core_type = #tpu.core_type<tc>, window_params = [{transform_indices = @transform_0, window_bounds = array<i64: 16, 13>}, {transform_indices = @transform_1, window_bounds = array<i64: 16, 1>}, {transform_indices = @transform_2, window_bounds = array<i64: 1, 1>}, {transform_indices = @transform_3, window_bounds = array<i64: 1, 1>}]} {
    %c0 = arith.constant 0 : index
    %c0_0 = arith.constant 0 : index
    %0 = vector.load %arg1[%c0, %c0_0] : memref<16x13xf32, #tpu.memory_space<vmem>>, vector<16x13xf32>
    %c0_1 = arith.constant 0 : index
    %c0_2 = arith.constant 0 : index
    %1 = vector.load %arg2[%c0_1, %c0_2] : memref<16x1xi32, #tpu.memory_space<vmem>>, vector<16x1xi32>
    %cst = arith.constant dense<0xFF800000> : vector<16xf32>
    %2 = vector.multi_reduction <maximumf>, %0, %cst [1] : vector<16x13xf32> to vector<16xf32>
    %3 = vector.shape_cast %2 : vector<16xf32> to vector<16x1xf32>
    %4 = vector.broadcast %3 : vector<16x1xf32> to vector<16x13xf32>
    %5 = arith.subf %0, %4 : vector<16x13xf32>
    %6 = math.exp %5 : vector<16x13xf32>
    %cst_3 = arith.constant dense<0.000000e+00> : vector<16xf32>
    %7 = vector.multi_reduction <add>, %6, %cst_3 [1] : vector<16x13xf32> to vector<16xf32>
    %8 = vector.shape_cast %7 : vector<16xf32> to vector<16x1xf32>
    %9 = math.log %8 : vector<16x1xf32>
    %10 = arith.addf %3, %9 : vector<16x1xf32>
    %11 = tpu.iota {dimensions = array<i32: 1>} : vector<16x13xi32>
    %12 = vector.broadcast %1 : vector<16x1xi32> to vector<16x13xi32>
    %13 = arith.cmpi eq, %11, %12 : vector<16x13xi32>
    %cst_4 = arith.constant 0.907692313 : f32
    %cst_5 = arith.constant 0.0076923077 : f32
    %14 = vector.broadcast %cst_4 : f32 to vector<16x13xf32>
    %15 = vector.broadcast %cst_5 : f32 to vector<16x13xf32>
    %16 = arith.select %13, %14, %15 : vector<16x13xi1>, vector<16x13xf32>
    %17 = arith.mulf %16, %0 : vector<16x13xf32>
    %cst_6 = arith.constant dense<0.000000e+00> : vector<16xf32>
    %18 = vector.multi_reduction <add>, %17, %cst_6 [1] : vector<16x13xf32> to vector<16xf32>
    %19 = vector.shape_cast %18 : vector<16xf32> to vector<16x1xf32>
    %20 = arith.subf %10, %19 : vector<16x1xf32>
    %c-100_i32 = arith.constant -100 : i32
    %21 = vector.broadcast %c-100_i32 : i32 to vector<16x1xi32>
    %22 = arith.cmpi ne, %1, %21 : vector<16x1xi32>
    %cst_7 = arith.constant 0.000000e+00 : f32
    %23 = vector.broadcast %cst_7 : f32 to vector<16x1xf32>
    %24 = arith.select %22, %20, %23 : vector<16x1xi1>, vector<16x1xf32>
    %25 = vector.shape_cast %24 : vector<16x1xf32> to vector<1x16x1xf32>
    %cst_8 = arith.constant dense<0.000000e+00> : vector<1xf32>
    %26 = vector.multi_reduction <add>, %25, %cst_8 [1, 2] : vector<1x16x1xf32> to vector<1xf32>
    %27 = vector.shape_cast %26 : vector<1xf32> to vector<1x1x1xf32>
    %28 = vector.extract %27[0, 0, 0] : f32 from vector<1x1x1xf32>
    %c0_9 = arith.constant 0 : index
    %c0_10 = arith.constant 0 : index
    %29 = memref.load %arg3[%c0_9, %c0_10] : memref<1x1xf32, #tpu.memory_space<smem>>
    memref.store %28, %arg3[%c0_9, %c0_10] : memref<1x1xf32, #tpu.memory_space<smem>>
    %30 = arith.extui %22 : vector<16x1xi1> to vector<16x1xi32>
    %31 = arith.sitofp %30 : vector<16x1xi32> to vector<16x1xf32>
    %32 = vector.shape_cast %31 : vector<16x1xf32> to vector<1x16x1xf32>
    %cst_11 = arith.constant dense<0.000000e+00> : vector<1xf32>
    %33 = vector.multi_reduction <add>, %32, %cst_11 [1, 2] : vector<1x16x1xf32> to vector<1xf32>
    %34 = vector.shape_cast %33 : vector<1xf32> to vector<1x1x1xf32>
    %35 = vector.extract %34[0, 0, 0] : f32 from vector<1x1x1xf32>
    %c0_12 = arith.constant 0 : index
    %c0_13 = arith.constant 0 : index
    %36 = memref.load %arg4[%c0_12, %c0_13] : memref<1x1xf32, #tpu.memory_space<smem>>
    memref.store %35, %arg4[%c0_12, %c0_13] : memref<1x1xf32, #tpu.memory_space<smem>>
    return
  }
  func.func @transform_0(%arg0: i32) -> (i32, i32) {
    %c0_i32 = arith.constant 0 : i32
    %c0_i32_0 = arith.constant 0 : i32
    return %arg0, %c0_i32 : i32, i32
  }
  func.func @transform_1(%arg0: i32) -> (i32, i32) {
    %c0_i32 = arith.constant 0 : i32
    %c0_i32_0 = arith.constant 0 : i32
    return %arg0, %c0_i32 : i32, i32
  }
  func.func @transform_2(%arg0: i32) -> (i32, i32) {
    %c0_i32 = arith.constant 0 : i32
    %c0_i32_0 = arith.constant 0 : i32
    return %arg0, %c0_i32 : i32, i32
  }
  func.func @transform_3(%arg0: i32) -> (i32, i32) {
    %c0_i32 = arith.constant 0 : i32
    %c0_i32_0 = arith.constant 0 : i32
    return %arg0, %c0_i32 : i32, i32
  }
}

</mosaic_0001>

<bundles_post_ra>
// kernel: tpu_custom_call.1
= control target key start
LH: loop header
LB: loop body
LE: loop exit
PB: predicated region body
PF: predicated region fallthrough
CT: control target
= control target key end

     0   :  { %9 = vsyncpa [#allocation3], 0  ;;  %vm19_vm0 = vcmask 105472   ;;  %v181_v3 = vmov 0   ;;  %s244_s0 = inlined_call_operand.vmem [shape: f32[16,13], index: 0, kind: input, shape index: {}]   ;;  %s245_s1 = inlined_call_operand.vmem [shape: s32[16,1], index: 1, kind: input, shape index: {}]   ;;  %s246_s2 = inlined_call_operand.hbm [shape: f32[1,1], index: 2, kind: output, shape index: {0}]   ;;  %s247_s3 = inlined_call_operand.hbm [shape: f32[1,1], index: 3, kind: output, shape index: {1}]  }
   0x1   :  { %v15_v0 = vld [vmem:[%s244_s0] sm:$0xff]  ;;  %143 = vset.pattern.permute.xlu1 %v181_v3  ;;  %144 = vset.pattern.permute.xlu0 %v181_v3 }
   0x2   :  { %v212_v1 = vld [vmem:[%s245_s1] sm:$0xff]  ;;  %v20_v2 = vsel %vm19_vm0, %v15_v0, -inf }
   0x3   :  { %10 = vsyncpa [#allocation5], 0  ;;  %21 = vmax.xlane.f32.xlu0 %v20_v2  ;;  %47 = vperm.xlu1 %143, %v212_v1   ;;  %v16_v4 = vld [vmem:[%s244_s0 + $0x8] sm:$0xff]  ;;  %v44_v7 = vlaneseq  ;;  %v182_v12 = vmov 0.0076923077   ;;  %vm66_vm3 = vcmp.ne.s32.totalorder %v212_v1, 4294967196 }
   0x4   :  { %v23_v5 = vsel %vm19_vm0, %v16_v4, -inf  ;;  %v18_v6 = vld [vmem:[%s245_s1 + $0x8] sm:$0xff]  ;;  %v183_v28 = vmov 0.0   ;;  %vm70_vm5 = vcmask 7168   ;;  %s108_s20 = sshll.u32 %s246_s2, 4  ;;  %s117_s23 = sshll.u32 %s247_s3, 4  ;;  %s109_s20 = int_to_ptr.hbm [resolvable:$true] %s108_s20  ;;  %s118_s23 = int_to_ptr.hbm [resolvable:$true] %s117_s23 }
   0x5   :  { %v45_v8 = vand.u32 127, %v44_v7  ;;  %vm67_vm4 = vcmp.ne.s32.totalorder %v18_v6, 4294967196  ;;  %v132_v29 = vsel %vm66_vm3, 1.0, %v183_v28  ;;  %s184_s26 = smov [#allocation2]   ;;  %s185_s27 = smov [#allocation4]  }
   0x6   :  { %v133_v30 = vsel %vm67_vm4, 1.0, %v183_v28  ;;  %v89_v31 = vsel %vm70_vm5, %v132_v29, 0.0 }
   0x7   :  { %v90_v32 = vsel %vm70_vm5, %v133_v30, 0.0 }
   0x8   :  { %v91_v33 = vadd.f32 %v90_v32, %v89_v31 }
   0xb   :  { %24 = vmax.xlane.f32.xlu0 %v23_v5  ;;  %50 = vperm.xlu1 %143, %v18_v6  }
  0x75   :  { %v48_v9 = vpop.permute.xlu1 %47 }
  0x76   :  { %v22_v10 = vpop.xlane.xlu0 %21  ;;  %vm52_vm1 = vcmp.eq.s32.totalorder %v45_v8, %v48_v9 }
  0x77   :  { %v26_v11 = vsub.f32 %v15_v0, %v22_v10  ;;  %v54_v13 = vsel %vm52_vm1, 0.9076923, %v182_v12 }
  0x78   :  { %v56_v14 = vmul.f32 %v54_v13, %v15_v0 }
  0x79   :  { %v28_v15 = vmul.f32 1.442695, %v26_v11 }
  0x7a   :  { %v58_v16 = vsel %vm19_vm0, %v56_v14, 0.0 }
  0x7b   :  { %145 = vpow2.f32 %v28_v15  ;;  %59 = vadd.xlane.f32.xlu0 %v58_v16 }
  0x7d   :  { %v51_v17 = vpop.permute.xlu1 %50 }
  0x7e   :  { %v25_v18 = vpop.xlane.xlu0 %24  ;;  %vm53_vm2 = vcmp.eq.s32.totalorder %v45_v8, %v51_v17 }
  0x7f   :  { %v27_v19 = vsub.f32 %v16_v4, %v25_v18  ;;  %v55_v20 = vsel %vm53_vm2, 0.9076923, %v182_v12 }
  0x80   :  { %v57_v21 = vmul.f32 %v55_v20, %v16_v4 }
  0x81   :  { %v146_v22 = vpop.eup %145  ;;  %v30_v23 = vmul.f32 1.442695, %v27_v19 }
  0x82   :  { %v32_v24 = vsel %vm19_vm0, %v146_v22, 0.0  ;;  %v61_v25 = vsel %vm19_vm0, %v57_v21, 0.0 }
  0x83   :  { %147 = vpow2.f32 %v30_v23  ;;  %33 = vadd.xlane.f32.xlu2 %v32_v24  ;;  %62 = vadd.xlane.f32.xlu1 %v61_v25 }
  0x84   :  { %92 = vadd.xlane.f32.xlu0 %v91_v33 }
  0x89   :  { %v148_v26 = vpop.eup %147 }
  0x8a   :  { %v35_v27 = vsel %vm19_vm0, %v148_v26, 0.0 }
  0x8b   :  { %36 = vadd.xlane.f32.xlu2 %v35_v27 }
  0xee   :  { %v60_v39 = vpop.xlane.xlu0 %59 }
  0xf6   :  { %v34_v34 = vpop.xlane.xlu2 %33  ;;  %v63_v44 = vpop.xlane.xlu1 %62 }
  0xf7   :  { %149 = vlog2.f32 %v34_v34  ;;  %v93_v51 = vpop.xlane.xlu0 %92 }
  0xf8   :  { %v94_v52 = vrot.slane %v93_v51, 4 }
  0xfa   :  { %v95_v53 = vadd.f32 %v94_v52, %v93_v51 }
  0xfc   :  { %v96_v54 = vrot.slane %v95_v53, 2 }
  0xfd   :  { %v150_v35 = vpop.eup %149 }
  0xfe   :  { %v39_v36 = vmul.f32 0.6931472, %v150_v35  ;;  %v37_v37 = vpop.xlane.xlu2 %36  ;;  %v97_v58 = vadd.f32 %v96_v54, %v95_v53 }
  0xff   :  { %151 = vlog2.f32 %v37_v37 }
 0x100   :  { %v42_v38 = vadd.f32 %v39_v36, %v22_v10  ;;  %v98_v61 = vrot.slane %v97_v58, 1 }
 0x102   :  { %v64_v42 = vsub.f32 %v42_v38, %v60_v39  ;;  %v99_v0 = vadd.f32 %v98_v61, %v97_v58 }
 0x104   :  { %v68_v46 = vsel %vm66_vm3, %v64_v42, 0.0 }
 0x105   :  { %v152_v40 = vpop.eup %151  ;;  %v71_v48 = vsel %vm70_vm5, %v68_v46, 0.0 }
 0x106   :  { %v41_v41 = vmul.f32 0.6931472, %v152_v40 }
 0x108   :  { %v43_v43 = vadd.f32 %v41_v41, %v25_v18 }
 0x10a   :  { %v65_v45 = vsub.f32 %v43_v43, %v63_v44 }
 0x10c   :  { %v69_v47 = vsel %vm67_vm4, %v65_v45, 0.0 }
 0x10d   :  { %v72_v49 = vsel %vm70_vm5, %v69_v47, 0.0 }
 0x10e   :  { %v73_v50 = vadd.f32 %v72_v49, %v71_v48 }
 0x110   :  { %74 = vadd.xlane.f32.xlu2 %v73_v50 }
 0x183   :  { %v75_v55 = vpop.xlane.xlu2 %74 }
 0x184   :  { %v76_v56 = vrot.slane %v75_v55, 4 }
 0x186   :  { %v77_v57 = vadd.f32 %v76_v56, %v75_v55 }
 0x188   :  { %v78_v59 = vrot.slane %v77_v57, 2 }
 0x18a   :  { %v79_v60 = vadd.f32 %v78_v59, %v77_v57 }
 0x18c   :  { %v80_v62 = vrot.slane %v79_v60, 1 }
 0x18e   :  { %v81_v63 = vadd.f32 %v80_v62, %v79_v60 }
 0x190   :  { %134 = vpush %v81_v63 }
 0x191   :  { %136 = vpush %v99_v0 }
 0x1c1   :  { %s135_s24 = spop %134 }
 0x1c2   :  { %84 = sst [smem:[#allocation2]] %s135_s24  ;;  %s137_s25 = spop %136 }
 0x1c3   :  { %102 = sst [smem:[#allocation4]] %s137_s25 }
 0x1c4   :  { %111 = dma.smem_to_hbm %s184_s26, 16, %s109_s20, [#allocation3]  }
 0x1c5   :  { %120 = dma.smem_to_hbm %s185_s27, 16, %s118_s23, [#allocation5]  }
 0x1c6   :  { %177 = dma.done.wait [#allocation3], 16  }
 0x1c7   :  { %178 = vsyncadd [#allocation3], 4294967280 }
 0x1c8   :  { %179 = dma.done.wait [#allocation5], 16  }
 0x1c9   :  { %180 = vsyncadd [#allocation5], 4294967280 }
 0x1ca   :  { %129 = sfence }
 0x1cb   :  { %130 = vsyncpa [#allocation3], 1 }
 0x1cc   :  { %131 = vsyncpa [#allocation5], 1 }

</bundles_post_ra>
